<compile_context>
chip_gen: v5e
topology: v5e:2x2
jax: 0.10.0
libtpu: 0.0.40
codegen_flags: <defaults>
</compile_context>

<pallas_src>
import functools

import jax
import jax.numpy as jnp
from jax import lax
from jax.experimental import pallas as pl
from jax.experimental.pallas import tpu as pltpu

GAMMA = 1.5
ALPHA = 0.25
LANES = 128
MAX_BLOCK_ROWS = 4096                 # 4096 x 128 x 4B = 2 MiB per f32 input block
VMEM_LIMIT_BYTES = 40 * 1024 * 1024   # > v5e's 16 MiB default, < v7x's 64 MiB physical


def _round_up(a, b):
    return -(-a // b) * b


def _sublane_multiple(dtype):
    # Min second-to-last tile dim: 8 for 32-bit, 16 for 16-bit, 32 for 8-bit/bool.
    return max(8, 32 // jnp.dtype(dtype).itemsize)


def _qfocal_kernel(pred_ref, true_ref, out_ref, *, gamma, alpha,
                   needs_mask, valid_in_last):
    i = pl.program_id(0)
    last = pl.num_programs(0) - 1

    @pl.when(i == 0)
    def _():
        out_ref[...] = jnp.zeros_like(out_ref)

    x = pred_ref[...].astype(jnp.float32)
    y = true_ref[...].astype(jnp.float32)

    # exp(-|x|) is reused by both the stable BCE term and the sigmoid.
    e = jnp.exp(-jnp.abs(x))

    # BCEWithLogitsLoss(reduction='none'), numerically stable:
    #   max(x, 0) - x*y + log1p(exp(-|x|))
    bce = jnp.maximum(x, 0.0) - x * y + jnp.log1p(e)

    # sigmoid(x) = 1/(1+e) for x >= 0, e/(1+e) for x < 0  (exact, reuses e).
    inv = 1.0 / (1.0 + e)
    pred_prob = jnp.where(x >= 0.0, inv, e * inv)

    alpha_factor = y * alpha + (1.0 - y) * (1.0 - alpha)
    t = jnp.abs(y - pred_prob)
    if gamma == 1.5:
        modulating_factor = t * jnp.sqrt(t)      # one EUP op instead of exp(log())
    elif gamma == 2.0:
        modulating_factor = t * t
    elif gamma == 1.0:
        modulating_factor = t
    else:
        # Guard t==0 so the pow's exp(gamma*log(t)) never sees -inf.
        modulating_factor = jnp.power(
            jnp.maximum(t, jnp.finfo(jnp.float32).tiny), gamma)

    loss = bce * alpha_factor * modulating_factor

    rows, cols = loss.shape

    def accumulate(val):
        # (rows,128) -> (rows//8, 8, 128): preserves (8,128) vreg tiles, so the
        # reshape is a relayout-free view and the sum is pure VPU adds.  The
        # cross-lane reduction happens only once, in the wrapper.
        out_ref[...] += val.reshape(rows // 8, 8, cols).sum(axis=0)

    if needs_mask:
        # Last block is ragged (partial rows and/or lane padding).  Mask by the
        # flat element index within this block; pad/OOB data never contributes.
        @pl.when(i == last)
        def _():
            row_idx = lax.broadcasted_iota(jnp.int32, (rows, cols), 0)
            lane_idx = lax.broadcasted_iota(jnp.int32, (rows, cols), 1)
            mask = row_idx * cols + lane_idx < valid_in_last
            accumulate(jnp.where(mask, loss, 0.0))

        @pl.when(i != last)
        def _():
            accumulate(loss)
    else:
        accumulate(loss)


def qfocal_loss(pred, true, gamma=GAMMA, alpha=ALPHA, reduction="mean"):
    """QFocalLoss(BCEWithLogitsLoss(reduction=reduction)) forward pass."""
    assert pred.shape == true.shape
    n_valid = int(pred.size)
    assert n_valid > 0

    pred_f = pred.reshape(-1)
    true_f = true.reshape(-1)

    rows = pl.cdiv(n_valid, LANES)
    sub = max(_sublane_multiple(pred.dtype), _sublane_multiple(true.dtype))

    if rows <= MAX_BLOCK_ROWS:
        # Whole problem fits one block; full-dim block is always a legal tile.
        block_rows = _round_up(rows, sub)
        padded_rows = block_rows
        grid_r = 1
    else:
        block_rows = MAX_BLOCK_ROWS          # multiple of 32: legal for all dtypes
        padded_rows = rows                   # no row padding; last block is partial
        grid_r = pl.cdiv(rows, block_rows)

    target = padded_rows * LANES
    if target != n_valid:
        # Only lane-misaligned or tiny inputs hit this; pad values are irrelevant
        # because the in-kernel mask zeroes everything past n_valid.
        # TODO(synk): large lane-misaligned inputs still pay one jnp.pad copy;
        # a fully copy-free path would need 1-D blocks or a separate tail kernel.
        pred_f = jnp.pad(pred_f, (0, target - n_valid))
        true_f = jnp.pad(true_f, (0, target - n_valid))
    pred_f = pred_f.reshape(padded_rows, LANES)
    true_f = true_f.reshape(padded_rows, LANES)

    total_block_elems = grid_r * block_rows * LANES
    needs_mask = total_block_elems != n_valid
    valid_in_last = n_valid - (grid_r - 1) * block_rows * LANES

    kernel = functools.partial(
        _qfocal_kernel, gamma=gamma, alpha=alpha,
        needs_mask=needs_mask, valid_in_last=valid_in_last)

    bytes_accessed = int(pred_f.size) * pred_f.dtype.itemsize \
        + int(true_f.size) * true_f.dtype.itemsize + 8 * LANES * 4

    partial = pl.pallas_call(
        kernel,
        out_shape=jax.ShapeDtypeStruct((8, LANES), jnp.float32),
        grid=(grid_r,),
        in_specs=[
            pl.BlockSpec((block_rows, LANES), lambda i: (i, 0)),
            pl.BlockSpec((block_rows, LANES), lambda i: (i, 0)),
        ],
        # Constant block index along the reduction axis -> out stays VMEM-resident
        # and doubles as the accumulator.
        out_specs=pl.BlockSpec((8, LANES), lambda i: (0, 0)),
        compiler_params=pltpu.CompilerParams(
            dimension_semantics=("arbitrary",),
            vmem_limit_bytes=VMEM_LIMIT_BYTES,
        ),
        cost_estimate=pl.CostEstimate(
            flops=20 * n_valid,
            transcendentals=3 * n_valid,
            bytes_accessed=bytes_accessed,
        ),
    )(pred_f, true_f)

    total = jnp.sum(partial)

    if reduction == "mean":
        return total / n_valid
    elif reduction == "sum":
        return total
    else:
        # TODO(synk): reduction='none' (returning the full elementwise loss map)
        # is not wired through this fused-reduction kernel.
        raise NotImplementedError("reduction='none' not implemented")


def _reference(pred, true, gamma=GAMMA, alpha=ALPHA):
    x = pred.astype(jnp.float32)
    y = true.astype(jnp.float32)
    bce = jnp.maximum(x, 0.0) - x * y + jnp.log1p(jnp.exp(-jnp.abs(x)))
    p = jax.nn.sigmoid(x)
    af = y * alpha + (1.0 - y) * (1.0 - alpha)
    mf = jnp.abs(y - p) ** gamma
    return jnp.mean(bce * af * mf)


if __name__ == "__main__":
    key = jax.random.PRNGKey(0)
    k1, k2 = jax.random.split(key)

    # Tile-aligned case (no pad, no mask).
    B, C, H, W = 2, 4, 16, 16
    pred = jax.random.normal(k1, (B, C, H, W), dtype=jnp.float32)
    true = (jax.random.uniform(k2, (B, C, H, W)) > 0.5).astype(jnp.float32)
    out = jax.block_until_ready(qfocal_loss(pred, true))
    ref = _reference(pred, true)
    assert jnp.allclose(out, ref, rtol=1e-5, atol=1e-6), (out, ref)

    # Ragged / lane-misaligned case exercises the in-kernel tail mask.
    pred2 = jax.random.normal(k1, (3, 5, 7), dtype=jnp.float32)
    true2 = (jax.random.uniform(k2, (3, 5, 7)) > 0.5).astype(jnp.float32)
    out2 = jax.block_until_ready(qfocal_loss(pred2, true2))
    ref2 = _reference(pred2, true2)
    assert jnp.allclose(out2, ref2, rtol=1e-5, atol=1e-6), (out2, ref2)

    print("KERNEL_OK")
</pallas_src>

<mosaic_0001>
module attributes {stable_mosaic.version = 11 : i64} {
  func.func @_qfocal_kernel(%arg0: i32, %arg1: memref<16x128xf32, #tpu.memory_space<vmem>>, %arg2: memref<16x128xf32, #tpu.memory_space<vmem>>, %arg3: memref<8x128xf32, #tpu.memory_space<vmem>>) attributes {dimension_semantics = [#tpu.dimension_semantics<arbitrary>], iteration_bounds = array<i64: 1>, scalar_prefetch = 0 : i64, scratch_operands = 0 : i64, tpu.core_type = #tpu.core_type<tc>, window_params = [{transform_indices = @transform_0, window_bounds = array<i64: 16, 128>}, {transform_indices = @transform_1, window_bounds = array<i64: 16, 128>}, {pipeline_mode = #tpu.pipeline_mode<synchronous>, transform_indices = @transform_2, window_bounds = array<i64: 8, 128>}]} {
    %c0_i32 = arith.constant 0 : i32
    %0 = arith.cmpi eq, %arg0, %c0_i32 : i32
    %1 = arith.extui %0 : i1 to i32
    %c0_i32_0 = arith.constant 0 : i32
    %2 = arith.cmpi ne, %1, %c0_i32_0 : i32
    scf.if %2 {
      %cst_16 = arith.constant 0.000000e+00 : f32
      %41 = vector.broadcast %cst_16 : f32 to vector<8x128xf32>
      %c0_17 = arith.constant 0 : index
      %c0_18 = arith.constant 0 : index
      %42 = vector.load %arg3[%c0_17, %c0_18] : memref<8x128xf32, #tpu.memory_space<vmem>>, vector<8x128xf32>
      tpu.vector_store %arg3[%c0_17, %c0_18], %41 {strides = array<i32>} : memref<8x128xf32, #tpu.memory_space<vmem>>, vector<8x128xf32>,
    } else {
    }
    %c0 = arith.constant 0 : index
    %c0_1 = arith.constant 0 : index
    %3 = vector.load %arg1[%c0, %c0_1] : memref<16x128xf32, #tpu.memory_space<vmem>>, vector<16x128xf32>
    %c0_2 = arith.constant 0 : index
    %c0_3 = arith.constant 0 : index
    %4 = vector.load %arg2[%c0_2, %c0_3] : memref<16x128xf32, #tpu.memory_space<vmem>>, vector<16x128xf32>
    %5 = math.absf %3 : vector<16x128xf32>
    %cst = arith.constant 0.000000e+00 : f32
    %6 = vector.broadcast %cst : f32 to vector<16x128xf32>
    %7 = arith.subf %6, %5 : vector<16x128xf32>
    %8 = math.exp %7 : vector<16x128xf32>
    %cst_4 = arith.constant 0.000000e+00 : f32
    %9 = vector.broadcast %cst_4 : f32 to vector<16x128xf32>
    %10 = arith.maximumf %3, %9 : vector<16x128xf32>
    %11 = arith.mulf %3, %4 : vector<16x128xf32>
    %12 = arith.subf %10, %11 : vector<16x128xf32>
    %13 = math.log1p %8 : vector<16x128xf32>
    %14 = arith.addf %12, %13 : vector<16x128xf32>
    %cst_5 = arith.constant 1.000000e+00 : f32
    %15 = vector.broadcast %cst_5 : f32 to vector<16x128xf32>
    %16 = arith.addf %15, %8 : vector<16x128xf32>
    %cst_6 = arith.constant 1.000000e+00 : f32
    %17 = vector.broadcast %cst_6 : f32 to vector<16x128xf32>
    %18 = arith.divf %17, %16 : vector<16x128xf32>
    %cst_7 = arith.constant 0.000000e+00 : f32
    %19 = vector.broadcast %cst_7 : f32 to vector<16x128xf32>
    %20 = arith.cmpf oge, %3, %19 : vector<16x128xf32>
    %21 = arith.mulf %8, %18 : vector<16x128xf32>
    %22 = arith.select %20, %18, %21 : vector<16x128xi1>, vector<16x128xf32>
    %cst_8 = arith.constant 2.500000e-01 : f32
    %23 = vector.broadcast %cst_8 : f32 to vector<16x128xf32>
    %24 = arith.mulf %4, %23 : vector<16x128xf32>
    %cst_9 = arith.constant 1.000000e+00 : f32
    %25 = vector.broadcast %cst_9 : f32 to vector<16x128xf32>
    %26 = arith.subf %25, %4 : vector<16x128xf32>
    %cst_10 = arith.constant 7.500000e-01 : f32
    %27 = vector.broadcast %cst_10 : f32 to vector<16x128xf32>
    %28 = arith.mulf %26, %27 : vector<16x128xf32>
    %29 = arith.addf %24, %28 : vector<16x128xf32>
    %30 = arith.subf %4, %22 : vector<16x128xf32>
    %31 = math.absf %30 : vector<16x128xf32>
    %32 = math.sqrt %31 : vector<16x128xf32>
    %33 = arith.mulf %31, %32 : vector<16x128xf32>
    %34 = arith.mulf %14, %29 : vector<16x128xf32>
    %35 = arith.mulf %34, %33 : vector<16x128xf32>
    %c0_11 = arith.constant 0 : index
    %c0_12 = arith.constant 0 : index
    %36 = vector.load %arg3[%c0_11, %c0_12] : memref<8x128xf32, #tpu.memory_space<vmem>>, vector<8x128xf32>
    %37 = vector.shape_cast %35 : vector<16x128xf32> to vector<2x8x128xf32>
    %cst_13 = arith.constant dense<0.000000e+00> : vector<8x128xf32>
    %38 = vector.multi_reduction <add>, %37, %cst_13 [0] : vector<2x8x128xf32> to vector<8x128xf32>
    %39 = arith.addf %36, %38 : vector<8x128xf32>
    %c0_14 = arith.constant 0 : index
    %c0_15 = arith.constant 0 : index
    %40 = vector.load %arg3[%c0_14, %c0_15] : memref<8x128xf32, #tpu.memory_space<vmem>>, vector<8x128xf32>
    tpu.vector_store %arg3[%c0_14, %c0_15], %39 {strides = array<i32>} : memref<8x128xf32, #tpu.memory_space<vmem>>, vector<8x128xf32>,
    return
  }
  func.func @transform_0(%arg0: i32) -> (i32, i32) {
    %c0_i32 = arith.constant 0 : i32
    %c0_i32_0 = arith.constant 0 : i32
    return %arg0, %c0_i32 : i32, i32
  }
  func.func @transform_1(%arg0: i32) -> (i32, i32) {
    %c0_i32 = arith.constant 0 : i32
    %c0_i32_0 = arith.constant 0 : i32
    return %arg0, %c0_i32 : i32, i32
  }
  func.func @transform_2(%arg0: i32) -> (i32, i32) {
    %c0_i32 = arith.constant 0 : i32
    %c0_i32_0 = arith.constant 0 : i32
    %c0_i32_1 = arith.constant 0 : i32
    return %c0_i32, %c0_i32_0 : i32, i32
  }
}

</mosaic_0001>

<bundles_post_ra>
// kernel: tpu_custom_call.1
= control target key start
LH: loop header
LB: loop body
LE: loop exit
PB: predicated region body
PF: predicated region fallthrough
CT: control target
= control target key end

     0   :  { %7 = vsyncpa [#allocation3], 0  ;;  %s366_s0 = inlined_call_operand.hbm [shape: f32[16,128], index: 0, kind: input, shape index: {}]   ;;  %s367_s1 = inlined_call_operand.hbm [shape: f32[16,128], index: 1, kind: input, shape index: {}]   ;;  %s368_s2 = inlined_call_operand.hbm [shape: f32[8,128], index: 2, kind: output, shape index: {}]  }
   0x1   :  { %8 = vsyncpa [#allocation6], 0 }
   0x2   :  { %9 = vsyncpa [#allocation4], 0  ;;  %s14_s11 = sshll.u32 %s366_s0, 4  ;;  %s289_s12 = smov [#allocation2]   ;;  %s15_s11 = int_to_ptr.hbm [resolvable:$true] %s14_s11 }
   0x3   :  { %s16_s13 = sshll.u32 %s289_s12, 4  ;;  %s27_s16 = sshll.u32 %s367_s1, 4  ;;  %s17_s13 = int_to_ptr.vmem [resolvable:$true] %s16_s13  ;;  %s28_s16 = int_to_ptr.hbm [resolvable:$true] %s27_s16 }
   0x4   :  { %s290_s17 = smov 128   ;;  %s291_s18 = smov 8  }
   0x5   :  { %22 = dma.hbm_to_vmem [thread:$0]  %s15_s11, 256, %s17_s13, [#allocation3], %s290_s17, %s290_s17, %s291_s18  }
   0x6   :  { %s292_s19 = smov [#allocation5]  }
   0x7   :  { %s29_s20 = sshll.u32 %s292_s19, 4  ;;  %s30_s20 = int_to_ptr.vmem [resolvable:$true] %s29_s20 }
   0x8   :  { %35 = dma.hbm_to_vmem [thread:$0]  %s28_s16, 256, %s30_s20, [#allocation6], %s290_s17, %s290_s17, %s291_s18  }
   0x9   :  { %283 = dma.done.wait [#allocation3], 256  }
   0xa   :  { %284 = vsyncadd [#allocation3], 4294967040 }
   0xb   :  { %285 = dma.done.wait [#allocation6], 256  }
   0xc   :  { %286 = vsyncadd [#allocation6], 4294967040  ;;  %v315_v0 = vld [vmem:[#allocation2] sm:$0xff]  ;;  %v317_v1 = vld [vmem:[#allocation2 + $0x8] sm:$0xff]  ;;  %s293_s0 = smov [#allocation7]   ;;  %s178_s23 = sshll.u32 %s368_s2, 4  ;;  %s179_s23 = int_to_ptr.hbm [resolvable:$true] %s178_s23 }
   0xd   :  { %v53_v2 = vand.u32 2147483647, %v315_v0  ;;  %v54_v3 = vand.u32 2147483647, %v317_v1  ;;  %vm119_vm8 = vcmp.ge.f32.partialorder %v315_v0, 0.0  ;;  %v51_v31 = vld [vmem:[#allocation5] sm:$0xff] }
   0xe   :  { %vm120_vm9 = vcmp.ge.f32.partialorder %v317_v1, 0.0  ;;  %v52_v34 = vld [vmem:[#allocation5 + $0x8] sm:$0xff]  ;;  %v61_v50 = vmax.f32 %v315_v0, 0.0  ;;  %v63_v51 = vmul.f32 %v51_v31, %v315_v0  ;;  %v62_v54 = vmax.f32 %v317_v1, 0.0  ;;  %s176_s1 = sshll.u32 %s293_s0, 4  ;;  %s177_s1 = int_to_ptr.vmem [resolvable:$true] %s176_s1 }
   0xf   :  { %v55_v4 = vsub.f32 0.0, %v53_v2  ;;  %v56_v5 = vsub.f32 0.0, %v54_v3  ;;  %v127_v55 = vsub.f32 1.0, %v51_v31  ;;  %v128_v56 = vsub.f32 1.0, %v52_v34 }
  0x10   :  { %v64_v58 = vmul.f32 %v52_v34, %v317_v1  ;;  %v65_v3 = vsub.f32 %v61_v50, %v63_v51  ;;  %v126_v1 = vmul.f32 0.25, %v52_v34 }
  0x11   :  { %v57_v6 = vmul.f32 1.442695, %v55_v4  ;;  %v59_v7 = vmul.f32 1.442695, %v56_v5  ;;  %v125_v5 = vmul.f32 0.25, %v51_v31 }
  0x13   :  { %195 = vpow2.f32 %v57_v6 }
  0x14   :  { %197 = vpow2.f32 %v59_v7  ;;  %v129_v7 = vmul.f32 0.75, %v127_v55 }
  0x19   :  { %v321_v8 = vpop.eup %195 }
  0x1a   :  { %v323_v9 = vpop.eup %197  ;;  %v67_v10 = vadd.f32 1.0, %v321_v8  ;;  %v70_v42 = vmul.f32 -0.5, %v321_v8  ;;  %v73_v47 = vand.u32 2147483647, %v321_v8 }
  0x1b   :  { %v76_v11 = vadd.f32 1.0, %v323_v9  ;;  %v79_v43 = vmul.f32 -0.5, %v323_v9  ;;  %v82_v52 = vand.u32 2147483647, %v323_v9 }
  0x1c   :  { %199 = vrcp.f32 %v67_v10  ;;  %vm94_vm0 = vweird.f32 %v67_v10  ;;  %v100_v15 = vand.u32 2147483648, %v67_v10  ;;  %v98_v18 = vand.u32 2147483647, %v67_v10 }
  0x1d   :  { %201 = vrcp.f32 %v76_v11  ;;  %v115_v19 = vand.u32 2147483648, %v76_v11  ;;  %vm109_vm2 = vweird.f32 %v76_v11  ;;  %v113_v21 = vand.u32 2147483647, %v76_v11 }
  0x1e   :  { %v101_v23 = vor.u32 1.1754944e-38, %v100_v15  ;;  %vm99_vm5 = vcmp.eq.f32.partialorder %v98_v18, 8.507059e+37  ;;  %203 = vlog2.f32 %v67_v10  ;;  %v71_v45 = vadd.f32 1.0, %v70_v42 }
  0x1f   :  { %v116_v26 = vor.u32 1.1754944e-38, %v115_v19  ;;  %vm114_vm7 = vcmp.eq.f32.partialorder %v113_v21, 8.507059e+37  ;;  %205 = vlog2.f32 %v76_v11  ;;  %v80_v48 = vadd.f32 1.0, %v79_v43 }
  0x20   :  { %v72_v60 = vmul.f32 %v321_v8, %v71_v45  ;;  %vm344_vm10 = vcmp.lt.f32.partialorder %v73_v47, 0.0004427343  ;;  %vm349_vm11 = vcmp.lt.f32.partialorder %v82_v52, 0.0004427343 }
  0x21   :  { %v81_v0 = vmul.f32 %v323_v9, %v80_v48 }
  0x22   :  { %v200_v12 = vpop.eup %199 }
  0x23   :  { %v202_v13 = vpop.eup %201  ;;  %v90_v14 = vmul.f32 %v200_v12, %v67_v10  ;;  %vm95_vm1 = vweird.f32 %v200_v12  ;;  %v130_v10 = vmul.f32 0.75, %v128_v56 }
  0x24   :  { %v105_v16 = vmul.f32 %v202_v13, %v76_v11  ;;  %vm110_vm3 = vweird.f32 %v202_v13  ;;  %vm96_vm4 = vmor %vm94_vm0, %vm95_vm1  ;;  %v204_v44 = vpop.eup %203  ;;  %v66_v11 = vsub.f32 %v62_v54, %v64_v58 }
  0x25   :  { %v91_v17 = vsub.f32 1.0, %v90_v14  ;;  %vm111_vm6 = vmor %vm109_vm2, %vm110_vm3  ;;  %v206_v46 = vpop.eup %205  ;;  %v69_v59 = vmul.f32 0.6931472, %v204_v44  ;;  %v132_v18 = vadd.f32 %v130_v10, %v126_v1 }
  0x26   :  { %v106_v20 = vsub.f32 1.0, %v105_v16  ;;  %v78_v63 = vmul.f32 0.6931472, %v206_v46 }
  0x27   :  { %v92_v22 = vmul.f32 %v200_v12, %v91_v17  ;;  %v131_v17 = vadd.f32 %v129_v7, %v125_v5 }
  0x28   :  { %v107_v24 = vmul.f32 %v202_v13, %v106_v20 }
  0x29   :  { %v93_v25 = vadd.f32 %v200_v12, %v92_v22 }
  0x2a   :  { %v108_v27 = vadd.f32 %v202_v13, %v107_v24 }
  0x2b   :  { %v97_v28 = vsel %vm96_vm4, %v200_v12, %v93_v25  ;;  %v75_v12 = vsel %vm344_vm10, %v72_v60, %v69_v59 }
  0x2c   :  { %v102_v29 = vsel %vm99_vm5, %v101_v23, %v97_v28  ;;  %v112_v30 = vsel %vm111_vm6, %v202_v13, %v108_v27  ;;  %v85_v16 = vadd.f32 %v75_v12, %v65_v3 }
  0x2d   :  { %v117_v32 = vsel %vm114_vm7, %v116_v26, %v112_v30  ;;  %v121_v33 = vmul.f32 %v321_v8, %v102_v29 }
  0x2e   :  { %v122_v35 = vmul.f32 %v323_v9, %v117_v32  ;;  %v84_v9 = vsel %vm349_vm11, %v81_v0, %v78_v63  ;;  %v163_v27 = vmul.f32 %v131_v17, %v85_v16 }
  0x2f   :  { %v123_v36 = vsel %vm119_vm8, %v102_v29, %v121_v33  ;;  %v86_v20 = vadd.f32 %v84_v9, %v66_v11 }
  0x30   :  { %v124_v37 = vsel %vm120_vm9, %v117_v32, %v122_v35  ;;  %v133_v38 = vsub.f32 %v51_v31, %v123_v36 }
  0x31   :  { %v134_v39 = vsub.f32 %v52_v34, %v124_v37  ;;  %v164_v30 = vmul.f32 %v132_v18, %v86_v20 }
  0x32   :  { %v331_v40 = vand.u32 2147483647, %v133_v38 }
  0x33   :  { %v136_v41 = vand.u32 2147483647, %v134_v39 }
  0x34   :  { %207 = vrsqrt.f32 %v331_v40  ;;  %vm144_vm12 = vcmp.eq.f32.partialorder %v331_v40, inf  ;;  %v147_v21 = vand.u32 2147483648, %v331_v40  ;;  %vm146_vm13 = vcmp.eq.f32.partialorder %v331_v40, 0.0 }
  0x35   :  { %209 = vrsqrt.f32 %v136_v41  ;;  %vm156_vm14 = vcmp.eq.f32.partialorder %v136_v41, inf  ;;  %v159_v24 = vand.u32 2147483648, %v136_v41  ;;  %vm158_vm15 = vcmp.eq.f32.partialorder %v136_v41, 0.0 }
  0x3a   :  { %v208_v49 = vpop.eup %207 }
  0x3b   :  { %v210_v53 = vpop.eup %209  ;;  %v138_v57 = vmul.f32 %v208_v49, %v331_v40 }
  0x3c   :  { %v150_v61 = vmul.f32 %v210_v53, %v136_v41 }
  0x3d   :  { %v139_v2 = vmul.f32 %v208_v49, %v138_v57 }
  0x3e   :  { %v151_v6 = vmul.f32 %v210_v53, %v150_v61 }
  0x3f   :  { %v140_v8 = vmul.f32 0.5, %v139_v2 }
  0x40   :  { %v152_v13 = vmul.f32 0.5, %v151_v6 }
  0x41   :  { %v141_v14 = vsub.f32 1.5, %v140_v8 }
  0x42   :  { %v153_v15 = vsub.f32 1.5, %v152_v13 }
  0x43   :  { %v142_v19 = vmul.f32 %v208_v49, %v141_v14 }
  0x44   :  { %v154_v22 = vmul.f32 %v210_v53, %v153_v15 }
  0x45   :  { %v143_v23 = vmul.f32 %v142_v19, %v331_v40 }
  0x46   :  { %v155_v25 = vmul.f32 %v154_v22, %v136_v41 }
  0x47   :  { %v145_v26 = vsel %vm144_vm12, %v331_v40, %v143_v23 }
  0x48   :  { %v148_v28 = vsel %vm146_vm13, %v147_v21, %v145_v26  ;;  %v157_v29 = vsel %vm156_vm14, %v136_v41, %v155_v25 }
  0x49   :  { %v160_v31 = vsel %vm158_vm15, %v159_v24, %v157_v29  ;;  %v161_v32 = vmul.f32 %v148_v28, %v331_v40 }
  0x4a   :  { %v162_v33 = vmul.f32 %v160_v31, %v136_v41 }
  0x4b   :  { %v165_v34 = vmul.f32 %v163_v27, %v161_v32 }
  0x4c   :  { %v166_v35 = vmul.f32 %v164_v30, %v162_v33 }
  0x4e   :  { %v168_v36 = vadd.f32 %v166_v35, %v165_v34 }
  0x50   :  { %170 = vst [vmem:[#allocation7] sm:$0xff] %v168_v36 }
  0x51   :  { %181 = dma.vmem_to_hbm [thread:$0]  %s177_s1, 128, %s179_s23, [#allocation4]  }
  0x52   :  { %287 = dma.done.wait [#allocation4], 128  }
  0x53   :  { %288 = vsyncadd [#allocation4], 4294967168 }
  0x54   :  { %186 = vsyncpa [#allocation3], 1 }
  0x55   :  { %187 = vsyncpa [#allocation6], 1 }
  0x56   :  { %188 = vsyncpa [#allocation4], 1 }

</bundles_post_ra>
